<compile_context>
chip_gen: v7x
topology: tpu7x:2x2x1
jax: 0.10.0
libtpu: 0.0.40
codegen_flags: <defaults>
</compile_context>

<pallas_src>
import jax
import jax.numpy as jnp
from jax.experimental import pallas as pl
from jax.experimental.pallas import tpu as pltpu


# --------------------------------------------------------------------------- #
# Kernel: broadcast one (tile_l, d_model) slice of the embedding table into a
# (tile_b, tile_l, d_model) output slab.
# --------------------------------------------------------------------------- #
def _pos_embed_broadcast_kernel(w_ref, o_ref):
    # w_ref : (tile_l, d_model)           VMEM tile of the embedding table
    # o_ref : (tile_b, tile_l, d_model)   output slab for tile_b batch rows
    o_ref[...] = jnp.broadcast_to(w_ref[...][None], o_ref.shape)


def _pick_tiles(max_len: int, d_model: int, batch_size: int, itemsize: int):
    """Length / batch tile sizes.

    tile_l: full extent when max_len <= 512 (full-dim blocks are always legal),
            else a fixed 512-row tile (multiple of every sublane packing: 8 for
            f32, 16 for bf16, 32 for int8/fp8) with a cdiv grid.
    tile_b: sized so one output block is ~6 MiB (multi-MiB blocks amortize the
            per-grid-step overhead), capped at batch_size.
    """
    tile_l = max_len if max_len <= 512 else 512
    target_bytes = 6 * 1024 * 1024
    per_batch_row = tile_l * d_model * itemsize
    tile_b = int(max(1, min(batch_size, target_bytes // per_batch_row)))
    return tile_l, tile_b


def positional_embedding_forward(weight: jax.Array, batch_size: int,
                                 *, core_parallel_batch: bool = False) -> jax.Array:
    """weight: (max_len, d_model) embedding table.

    Returns (batch_size, max_len, d_model) — the table repeated along batch,
    matching PositionalEmbedding.forward.
    """
    max_len, d_model = weight.shape
    itemsize = jnp.dtype(weight.dtype).itemsize
    tile_l, tile_b = _pick_tiles(max_len, d_model, batch_size, itemsize)
    num_l = pl.cdiv(max_len, tile_l)
    num_b = pl.cdiv(batch_size, tile_b)

    # Set core_parallel_batch=True on v7x (2 TensorCores/chip) to shard the
    # batch axis across both cores; leave off for single-TC v5e/v6e.
    batch_sem = pltpu.CORE_PARALLEL if core_parallel_batch else pltpu.PARALLEL

    return pl.pallas_call(
        _pos_embed_broadcast_kernel,
        out_shape=jax.ShapeDtypeStruct((batch_size, max_len, d_model), weight.dtype),
        # Length axis outermost -> weight tile fetched from HBM once per tile.
        grid=(num_l, num_b),
        in_specs=[
            pl.BlockSpec((tile_l, d_model), lambda l, b: (l, 0)),
        ],
        out_specs=pl.BlockSpec((tile_b, tile_l, d_model), lambda l, b: (b, l, 0)),
        compiler_params=pltpu.CompilerParams(
            dimension_semantics=(pltpu.PARALLEL, batch_sem)),
    )(weight)


# --------------------------------------------------------------------------- #
# Parameter init mirroring nn.Embedding (default N(0, 1) init).
# --------------------------------------------------------------------------- #
def init_params(key, max_len, d_model):
    return {"pos_embed_w": jax.random.normal(key, (max_len, d_model), jnp.float32)}


# --------------------------------------------------------------------------- #
# Pure-JAX reference (mirrors the PyTorch forward) for correctness checking.
# --------------------------------------------------------------------------- #
def reference_forward(params, x):
    batch_size = x.shape[0]
    w = params["pos_embed_w"]
    return jnp.broadcast_to(w[None], (batch_size,) + w.shape)


if __name__ == "__main__":
    key = jax.random.PRNGKey(0)
    k_w, k_x, k_w2 = jax.random.split(key, 3)

    # --- small demo shapes (d_model = 128 keeps stores lane-dense) ---------- #
    batch_size, seq_len = 4, 8
    max_len, d_model = 16, 128

    params = init_params(k_w, max_len, d_model)
    # x is only consulted for its batch dimension in the PyTorch forward.
    x = jax.random.randint(k_x, (batch_size, seq_len), 0, max_len, jnp.int32)

    out = positional_embedding_forward(params["pos_embed_w"], x.shape[0])
    jax.block_until_ready(out)

    ref = reference_forward(params, x)
    assert out.shape == (batch_size, max_len, d_model), "shape mismatch"
    assert jnp.array_equal(out, ref), "positional embedding broadcast mismatch"

    # --- second check: max_len not a tile multiple (exercises cdiv boundary) #
    max_len2, batch2 = 520, 3
    w2 = jax.random.normal(k_w2, (max_len2, d_model), jnp.float32)
    out2 = positional_embedding_forward(w2, batch2)
    jax.block_until_ready(out2)
    ref2 = jnp.broadcast_to(w2[None], (batch2, max_len2, d_model))
    assert out2.shape == (batch2, max_len2, d_model), "shape mismatch (boundary case)"
    assert jnp.array_equal(out2, ref2), "broadcast mismatch (boundary case)"

    print("KERNEL_OK")
</pallas_src>

<mosaic_0001>
module attributes {stable_mosaic.version = 11 : i64} {
  func.func @_pos_embed_broadcast_kernel(%arg0: i32, %arg1: i32, %arg2: memref<16x128xf32, #tpu.memory_space<vmem>>, %arg3: memref<4x16x128xf32, #tpu.memory_space<vmem>>) attributes {dimension_semantics = [#tpu.dimension_semantics<parallel>, #tpu.dimension_semantics<parallel>], iteration_bounds = array<i64: 1, 1>, scalar_prefetch = 0 : i64, scratch_operands = 0 : i64, tpu.core_type = #tpu.core_type<tc>, window_params = [{transform_indices = @transform_0, window_bounds = array<i64: 16, 128>}, {transform_indices = @transform_1, window_bounds = array<i64: 4, 16, 128>}]} {
    %c0 = arith.constant 0 : index
    %c0_0 = arith.constant 0 : index
    %0 = vector.load %arg2[%c0, %c0_0] : memref<16x128xf32, #tpu.memory_space<vmem>>, vector<16x128xf32>
    %1 = vector.shape_cast %0 : vector<16x128xf32> to vector<1x16x128xf32>
    %2 = vector.shape_cast %1 : vector<1x16x128xf32> to vector<1x16x128xf32>
    %3 = vector.broadcast %2 : vector<1x16x128xf32> to vector<4x16x128xf32>
    %c0_1 = arith.constant 0 : index
    %c0_2 = arith.constant 0 : index
    %c0_3 = arith.constant 0 : index
    %4 = vector.load %arg3[%c0_1, %c0_2, %c0_3] : memref<4x16x128xf32, #tpu.memory_space<vmem>>, vector<4x16x128xf32>
    tpu.vector_store %arg3[%c0_1, %c0_2, %c0_3], %3 {strides = array<i32>} : memref<4x16x128xf32, #tpu.memory_space<vmem>>, vector<4x16x128xf32>,
    return
  }
  func.func @transform_0(%arg0: i32, %arg1: i32) -> (i32, i32) {
    %c0_i32 = arith.constant 0 : i32
    %c0_i32_0 = arith.constant 0 : i32
    return %arg0, %c0_i32 : i32, i32
  }
  func.func @transform_1(%arg0: i32, %arg1: i32) -> (i32, i32, i32) {
    %c0_i32 = arith.constant 0 : i32
    %c0_i32_0 = arith.constant 0 : i32
    return %arg1, %arg0, %c0_i32 : i32, i32, i32
  }
}

</mosaic_0001>

<bundles_post_ra>
// kernel: tpu_custom_call.1
= control target key start
LH: loop header
LB: loop body
LE: loop exit
PB: predicated region body
PF: predicated region fallthrough
CT: control target
= control target key end

     0   :  { %6 = vsyncpa [#allocation3], 0  ;;  %s146_s0 = inlined_call_operand.hbm [shape: f32[16,128], index: 0, kind: input, shape index: {}]   ;;  %s147_s1 = inlined_call_operand.hbm [shape: f32[4,16,128], index: 1, kind: output, shape index: {}]  }
   0x1   :  { %7 = vsyncpa [#allocation4], 0  ;;  %s102_s6 = smov [#allocation2]   ;;  %s54_s10 = scalar_lea.hbm %s146_s0, 256 }
   0x2   :  { %s13_s7 = sshll.u32 %s102_s6, 4  ;;  %p55_p0 = scmp.ne.s32.totalorder %s146_s0, %s54_s10  ;;  %s14_s7 = int_to_ptr.vmem [resolvable:$true] %s13_s7 }
   0x3   :  { %p58_p1 = scmp.lt.u32.totalorder %s54_s10, %s146_s0 }
   0x5   :  { %p60_p2 = pnand %p58_p1, %p55_p0 }
   0x7   :  { %63 = shalt.err (!%p60_p2)
}
   0x8   :  { %s64_s15 = scalar_lea.vmem %s14_s7, 256  ;;  %p69_p4 = scmp.lt.s32.totalorder %s14_s7, %s14_s7 }
   0x9   :  { %p65_p3 = scmp.ne.s32.totalorder %s14_s7, %s64_s15  ;;  %p70_p5 = scmp.lt.s32.totalorder %s64_s15, %s64_s15 }
   0xb   :  { %p71_p6 = por %p70_p5, %p69_p4 }
   0xd   :  { %p72_p7 = pnand %p71_p6, %p65_p3 }
   0xf   :  { %75 = shalt.err (!%p72_p7)
}
  0x10   :  { %s103_s16 = smov 128   ;;  %s104_s17 = smov 8  }
  0x11   :  { %19 = dma.hbm_to_vmem [thread:$0]  %s146_s0, 256, %s14_s7, [#allocation3], %s103_s16, %s103_s16, %s104_s17  }
  0x12   :  { %98 = dma.done.wait [#allocation3], 256  }
  0x13   :  { %99 = vsyncadd [#allocation3], 4294967040  ;;  %s105_s20 = smov [#allocation5]   ;;  %v23_v0 = vld [vmem:[#allocation2] sm:$0xff]  ;;  %v24_v1 = vld [vmem:[#allocation2 + $0x8] sm:$0xff] }
  0x14   :  { %s38_s21 = sshll.u32 %s105_s20, 4  ;;  %25 = vst [vmem:[#allocation5] sm:$0xff] %v23_v0  ;;  %27 = vst [vmem:[#allocation5 + $0x10] sm:$0xff] %v23_v0  ;;  %s39_s21 = int_to_ptr.vmem [resolvable:$true] %s38_s21 }
  0x15   :  { %29 = vst [vmem:[#allocation5 + $0x20] sm:$0xff] %v23_v0  ;;  %31 = vst [vmem:[#allocation5 + $0x30] sm:$0xff] %v23_v0  ;;  %s76_s22 = scalar_lea.vmem %s39_s21, 1024  ;;  %p81_p9 = scmp.lt.s32.totalorder %s39_s21, %s39_s21 }
  0x16   :  { %26 = vst [vmem:[#allocation5 + $0x8] sm:$0xff] %v24_v1  ;;  %28 = vst [vmem:[#allocation5 + $0x18] sm:$0xff] %v24_v1  ;;  %p77_p8 = scmp.ne.s32.totalorder %s39_s21, %s76_s22  ;;  %p82_p10 = scmp.lt.s32.totalorder %s76_s22, %s76_s22 }
  0x17   :  { %30 = vst [vmem:[#allocation5 + $0x28] sm:$0xff] %v24_v1  ;;  %32 = vst [vmem:[#allocation5 + $0x38] sm:$0xff] %v24_v1 }
  0x18   :  { %p83_p11 = por %p82_p10, %p81_p9 }
  0x1a   :  { %p84_p12 = pnand %p83_p11, %p77_p8 }
  0x1c   :  { %87 = shalt.err (!%p84_p12)
}
  0x1d   :  { %s88_s24 = scalar_lea.hbm %s147_s1, 1024 }
  0x1e   :  { %p89_p13 = scmp.ne.s32.totalorder %s147_s1, %s88_s24  ;;  %p92_p0 = scmp.lt.u32.totalorder %s88_s24, %s147_s1 }
  0x20   :  { %p94_p1 = pnand %p92_p0, %p89_p13 }
  0x22   :  { %97 = shalt.err (!%p94_p1)
}
  0x23   :  { %44 = dma.vmem_to_hbm [thread:$0]  %s39_s21, 1024, %s147_s1, [#allocation4], %s103_s16, %s103_s16, %s104_s17  }
  0x24   :  { %100 = dma.done.wait [#allocation4], 1024  }
  0x25   :  { %101 = vsyncadd [#allocation4], 4294966272 }
  0x26   :  { %48 = vsyncpa [#allocation3], 1 }
  0x27   :  { %49 = vsyncpa [#allocation4], 1 }

</bundles_post_ra>
